<compile_context>
chip_gen: v7x
topology: tpu7x:2x2x1
jax: 0.10.0
libtpu: 0.0.40
codegen_flags: <defaults>
</compile_context>

<pallas_src>
import functools

import jax
import jax.numpy as jnp
from jax.experimental import pallas as pl
from jax.experimental.pallas import tpu as pltpu


def _round_up(n, m):
    return ((n + m - 1) // m) * m


def _mim_fwd_kernel(
    x_ref,        # (TB, Xp)        observed x tile (zero-padded lanes)
    eps_z_ref,    # (TB, Zp)        reparameterization noise for z
    eps_x_ref,    # (TB, Xp)        reparameterization noise for x
    w_enc_ref,    # (Xp, 2*Zp)      [w_enc_mu | w_enc_logstd]
    b_enc_ref,    # (1,  2*Zp)      [b_enc_mu | b_enc_logstd]
    w_dec_ref,    # (Zp, 2*Xp)      [w_dec_mu | w_dec_logstd]
    b_dec_ref,    # (1,  2*Xp)      [b_dec_mu | b_dec_logstd]
    z_slab_ref,   # (TB, 3*Zp) out: [z | mu_z | logstd_z]
    x_slab_ref,   # (TB, 3*Xp) out: [x | mu_x | logstd_x]
    *,
    zp,
    xp,
):
    x = x_ref[...]

    # ---- encoder: fused (mu_z, logstd_z) in one MXU matmul -------------------
    h_z = jnp.dot(x, w_enc_ref[...], preferred_element_type=jnp.float32)
    h_z = h_z + b_enc_ref[...]
    mu_z = h_z[:, :zp]          # 128-aligned static slices: no VMEM re-tiling
    logstd_z = h_z[:, zp:]

    # ---- rsample z = mu + exp(logstd) * eps (exp rides the EUP slot) ---------
    z = mu_z + jnp.exp(logstd_z) * eps_z_ref[...]

    # ---- decoder: fused (mu_x, logstd_x) in one MXU matmul -------------------
    h_x = jnp.dot(z, w_dec_ref[...], preferred_element_type=jnp.float32)
    h_x = h_x + b_dec_ref[...]
    mu_x = h_x[:, :xp]
    logstd_x = h_x[:, xp:]

    # ---- rsample x -----------------------------------------------------------
    x_samp = mu_x + jnp.exp(logstd_x) * eps_x_ref[...]

    # ---- lane-dense packed outputs (all segments 128-aligned, unmasked vst) --
    z_slab_ref[:, 0:zp] = z
    z_slab_ref[:, zp:2 * zp] = mu_z
    z_slab_ref[:, 2 * zp:3 * zp] = logstd_z
    x_slab_ref[:, 0:xp] = x_samp
    x_slab_ref[:, xp:2 * xp] = mu_x
    x_slab_ref[:, 2 * xp:3 * xp] = logstd_x


@functools.partial(jax.jit, static_argnames=("tile_b",))
def mim_forward(x_obs, eps_z, eps_x, params, tile_b=128):
    """MIM.forward(x_obs=...) -> (z, x, q_x, q_z_given_x, p_z, p_x_given_z).

    Distributions are dicts with 'mean' / 'logstd'. p_z / q_x are standard
    Normals returned as broadcastable (1,1) placeholders (no HBM traffic)."""
    B, X = x_obs.shape
    Z = params["w_enc_mu"].shape[1]

    Xp = _round_up(X, 128)
    Zp = _round_up(Z, 128)

    f32 = 4
    weight_bytes = 2 * (Xp * 2 * Zp + 2 * Zp + Zp * 2 * Xp + 2 * Xp) * f32

    def _vmem_estimate(t):
        # double-buffered streamed inputs + outputs, double-buffered params,
        # plus headroom for internal scratch / spills.
        stream = 2 * t * (Xp + Zp + Xp + 3 * Zp + 3 * Xp) * f32
        return stream + weight_bytes + (8 << 20)

    # ---- derive batch tile: large as possible, fit a v7x-safe 48 MiB budget --
    tb = min(tile_b, _round_up(B, 8))
    tb = _round_up(tb, 8)
    while tb > 8 and _vmem_estimate(tb) > (48 << 20):
        tb = _round_up(tb // 2, 8)
    vmem_limit = int(min(max(_vmem_estimate(tb), 16 << 20), 64 << 20))

    Bp = _round_up(B, tb)

    # ---- wrapper-side layout plumbing: pad + fuse weights --------------------
    x_p = jnp.pad(x_obs, ((0, Bp - B), (0, Xp - X)))
    eps_z_p = jnp.pad(eps_z, ((0, Bp - B), (0, Zp - Z)))
    eps_x_p = jnp.pad(eps_x, ((0, Bp - B), (0, Xp - X)))

    def _padw(w, rows, cols):
        return jnp.pad(w, ((0, rows - w.shape[0]), (0, cols - w.shape[1])))

    w_enc = jnp.concatenate(
        [_padw(params["w_enc_mu"], Xp, Zp), _padw(params["w_enc_ls"], Xp, Zp)], axis=1)
    b_enc = jnp.concatenate(
        [_padw(params["b_enc_mu"], 1, Zp), _padw(params["b_enc_ls"], 1, Zp)], axis=1)
    w_dec = jnp.concatenate(
        [_padw(params["w_dec_mu"], Zp, Xp), _padw(params["w_dec_ls"], Zp, Xp)], axis=1)
    b_dec = jnp.concatenate(
        [_padw(params["b_dec_mu"], 1, Xp), _padw(params["b_dec_ls"], 1, Xp)], axis=1)
    # (Padded bias lanes / eps lanes are 0, so padded z lanes are exactly 0 and do
    #  not perturb the decoder contraction.)

    grid = (Bp // tb,)

    def bmap(i):   # batch-tiled arrays
        return (i, 0)

    def pmap_(i):  # parameters: same block every grid step
        return (0, 0)

    kernel = functools.partial(_mim_fwd_kernel, zp=Zp, xp=Xp)

    # TODO(synk): weights could be cast to bf16 on v6e/v7x for extra VMEM/BW headroom.
    z_slab, x_slab = pl.pallas_call(
        kernel,
        out_shape=(
            jax.ShapeDtypeStruct((Bp, 3 * Zp), jnp.float32),
            jax.ShapeDtypeStruct((Bp, 3 * Xp), jnp.float32),
        ),
        grid_spec=pltpu.PrefetchScalarGridSpec(
            num_scalar_prefetch=0,
            grid=grid,
            in_specs=[
                pl.BlockSpec((tb, Xp), bmap),          # x_obs
                pl.BlockSpec((tb, Zp), bmap),          # eps_z
                pl.BlockSpec((tb, Xp), bmap),          # eps_x
                pl.BlockSpec((Xp, 2 * Zp), pmap_),     # w_enc (mu|logstd)
                pl.BlockSpec((1, 2 * Zp), pmap_),      # b_enc
                pl.BlockSpec((Zp, 2 * Xp), pmap_),     # w_dec (mu|logstd)
                pl.BlockSpec((1, 2 * Xp), pmap_),      # b_dec
            ],
            out_specs=(
                pl.BlockSpec((tb, 3 * Zp), bmap),
                pl.BlockSpec((tb, 3 * Xp), bmap),
            ),
        ),
        compiler_params=pltpu.CompilerParams(
            dimension_semantics=("parallel",),   # batch grid shards across v7x's 2 TCs
            vmem_limit_bytes=vmem_limit,
        ),
    )(x_p, eps_z_p, eps_x_p, w_enc, b_enc, w_dec, b_dec)

    # ---- unpack lane-dense slabs (cheap XLA slices) --------------------------
    z = z_slab[:B, :Z]
    mu_z = z_slab[:B, Zp:Zp + Z]
    logstd_z = z_slab[:B, 2 * Zp:2 * Zp + Z]
    x_samp = x_slab[:B, :X]
    mu_x = x_slab[:B, Xp:Xp + X]
    logstd_x = x_slab[:B, 2 * Xp:2 * Xp + X]

    q_z_given_x = {"mean": mu_z, "logstd": logstd_z}
    p_x_given_z = {"mean": mu_x, "logstd": logstd_x}
    # Standard-Normal priors as broadcastable placeholders (no (B, D) HBM writes).
    p_z = {"mean": jnp.zeros((1, 1), jnp.float32),
           "logstd": jnp.zeros((1, 1), jnp.float32)}
    q_x = {"mean": jnp.zeros((1, 1), jnp.float32),
           "logstd": jnp.zeros((1, 1), jnp.float32)}
    # TODO(synk): the PyTorch q_x=None branch patches q_x.log_prob with an
    # importance-weighted correction; forward() never evaluates it, so it is
    # not materialized here.

    return z, x_samp, q_x, q_z_given_x, p_z, p_x_given_z


def init_params(key, x_dim, z_dim):
    ks = jax.random.split(key, 4)
    scale_e = 1.0 / jnp.sqrt(jnp.float32(x_dim))
    scale_d = 1.0 / jnp.sqrt(jnp.float32(z_dim))
    return {
        "w_enc_mu": jax.random.normal(ks[0], (x_dim, z_dim), jnp.float32) * scale_e,
        "w_enc_ls": jax.random.normal(ks[1], (x_dim, z_dim), jnp.float32) * scale_e,
        "b_enc_mu": jnp.zeros((1, z_dim), jnp.float32),
        "b_enc_ls": jnp.full((1, z_dim), -1.0, jnp.float32),
        "w_dec_mu": jax.random.normal(ks[2], (z_dim, x_dim), jnp.float32) * scale_d,
        "w_dec_ls": jax.random.normal(ks[3], (z_dim, x_dim), jnp.float32) * scale_d,
        "b_dec_mu": jnp.zeros((1, x_dim), jnp.float32),
        "b_dec_ls": jnp.full((1, x_dim), -1.0, jnp.float32),
    }


if __name__ == "__main__":
    B, X_DIM, Z_DIM = 16, 32, 16   # small test shapes; batch tile clamps to B

    key = jax.random.PRNGKey(0)
    k_x, k_ez, k_ex, k_p = jax.random.split(key, 4)

    x_obs = jax.random.normal(k_x, (B, X_DIM), jnp.float32)
    eps_z = jax.random.normal(k_ez, (B, Z_DIM), jnp.float32)
    eps_x = jax.random.normal(k_ex, (B, X_DIM), jnp.float32)
    params = init_params(k_p, X_DIM, Z_DIM)

    outs = mim_forward(x_obs, eps_z, eps_x, params)
    outs = jax.block_until_ready(outs)

    z, x_samp, q_x, q_z_given_x, p_z, p_x_given_z = outs

    # Reference check against plain JAX (same math, no Pallas).
    mu_z_ref = x_obs @ params["w_enc_mu"] + params["b_enc_mu"]
    ls_z_ref = x_obs @ params["w_enc_ls"] + params["b_enc_ls"]
    z_ref = mu_z_ref + jnp.exp(ls_z_ref) * eps_z
    mu_x_ref = z_ref @ params["w_dec_mu"] + params["b_dec_mu"]
    ls_x_ref = z_ref @ params["w_dec_ls"] + params["b_dec_ls"]
    x_ref = mu_x_ref + jnp.exp(ls_x_ref) * eps_x

    assert jnp.allclose(z, z_ref, atol=1e-5, rtol=1e-5)
    assert jnp.allclose(x_samp, x_ref, atol=1e-5, rtol=1e-5)
    assert jnp.allclose(q_z_given_x["mean"], mu_z_ref, atol=1e-5, rtol=1e-5)
    assert jnp.allclose(q_z_given_x["logstd"], ls_z_ref, atol=1e-5, rtol=1e-5)
    assert jnp.allclose(p_x_given_z["mean"], mu_x_ref, atol=1e-5, rtol=1e-5)
    assert jnp.allclose(p_x_given_z["logstd"], ls_x_ref, atol=1e-5, rtol=1e-5)

    print("KERNEL_OK")
</pallas_src>

<mosaic_0001>
module attributes {stable_mosaic.version = 11 : i64} {
  func.func @_mim_fwd_kernel(%arg0: i32, %arg1: memref<16x128xf32, #tpu.memory_space<vmem>>, %arg2: memref<16x128xf32, #tpu.memory_space<vmem>>, %arg3: memref<16x128xf32, #tpu.memory_space<vmem>>, %arg4: memref<128x256xf32, #tpu.memory_space<vmem>>, %arg5: memref<1x256xf32, #tpu.memory_space<vmem>>, %arg6: memref<128x256xf32, #tpu.memory_space<vmem>>, %arg7: memref<1x256xf32, #tpu.memory_space<vmem>>, %arg8: memref<16x384xf32, #tpu.memory_space<vmem>>, %arg9: memref<16x384xf32, #tpu.memory_space<vmem>>) attributes {dimension_semantics = [#tpu.dimension_semantics<parallel>], iteration_bounds = array<i64: 1>, scalar_prefetch = 0 : i64, scratch_operands = 0 : i64, tpu.core_type = #tpu.core_type<tc>, window_params = [{transform_indices = @transform_0, window_bounds = array<i64: 16, 128>}, {transform_indices = @transform_1, window_bounds = array<i64: 16, 128>}, {transform_indices = @transform_2, window_bounds = array<i64: 16, 128>}, {pipeline_mode = #tpu.pipeline_mode<synchronous>, transform_indices = @transform_3, window_bounds = array<i64: 128, 256>}, {pipeline_mode = #tpu.pipeline_mode<synchronous>, transform_indices = @transform_4, window_bounds = array<i64: 1, 256>}, {pipeline_mode = #tpu.pipeline_mode<synchronous>, transform_indices = @transform_5, window_bounds = array<i64: 128, 256>}, {pipeline_mode = #tpu.pipeline_mode<synchronous>, transform_indices = @transform_6, window_bounds = array<i64: 1, 256>}, {transform_indices = @transform_7, window_bounds = array<i64: 16, 384>}, {transform_indices = @transform_8, window_bounds = array<i64: 16, 384>}]} {
    %c0 = arith.constant 0 : index
    %c0_0 = arith.constant 0 : index
    %0 = vector.load %arg1[%c0, %c0_0] : memref<16x128xf32, #tpu.memory_space<vmem>>, vector<16x128xf32>
    %c0_1 = arith.constant 0 : index
    %c0_2 = arith.constant 0 : index
    %1 = vector.load %arg4[%c0_1, %c0_2] : memref<128x256xf32, #tpu.memory_space<vmem>>, vector<128x256xf32>
    %cst = arith.constant dense<0.000000e+00> : vector<16x256xf32>
    %2 = tpu.matmul %0, %1, %cst {dimension_numbers = #tpu.dot_dimension_numbers<[1], [0], [0], [1], [0, 0, 1, 1], [], []>} : vector<16x128xf32>, vector<128x256xf32>, vector<16x256xf32> -> vector<16x256xf32>
    %c0_3 = arith.constant 0 : index
    %c0_4 = arith.constant 0 : index
    %3 = vector.load %arg5[%c0_3, %c0_4] : memref<1x256xf32, #tpu.memory_space<vmem>>, vector<1x256xf32>
    %4 = vector.broadcast %3 : vector<1x256xf32> to vector<16x256xf32>
    %5 = arith.addf %2, %4 : vector<16x256xf32>
    %6 = vector.extract_strided_slice %5 {offsets = [0, 0], sizes = [16, 128], strides = [1, 1]} : vector<16x256xf32> to vector<16x128xf32>
    %7 = vector.extract_strided_slice %5 {offsets = [0, 128], sizes = [16, 128], strides = [1, 1]} : vector<16x256xf32> to vector<16x128xf32>
    %8 = math.exp %7 : vector<16x128xf32>
    %c0_5 = arith.constant 0 : index
    %c0_6 = arith.constant 0 : index
    %9 = vector.load %arg2[%c0_5, %c0_6] : memref<16x128xf32, #tpu.memory_space<vmem>>, vector<16x128xf32>
    %10 = arith.mulf %8, %9 : vector<16x128xf32>
    %11 = arith.addf %6, %10 : vector<16x128xf32>
    %c0_7 = arith.constant 0 : index
    %c0_8 = arith.constant 0 : index
    %12 = vector.load %arg6[%c0_7, %c0_8] : memref<128x256xf32, #tpu.memory_space<vmem>>, vector<128x256xf32>
    %cst_9 = arith.constant dense<0.000000e+00> : vector<16x256xf32>
    %13 = tpu.matmul %11, %12, %cst_9 {dimension_numbers = #tpu.dot_dimension_numbers<[1], [0], [0], [1], [0, 0, 1, 1], [], []>} : vector<16x128xf32>, vector<128x256xf32>, vector<16x256xf32> -> vector<16x256xf32>
    %c0_10 = arith.constant 0 : index
    %c0_11 = arith.constant 0 : index
    %14 = vector.load %arg7[%c0_10, %c0_11] : memref<1x256xf32, #tpu.memory_space<vmem>>, vector<1x256xf32>
    %15 = vector.broadcast %14 : vector<1x256xf32> to vector<16x256xf32>
    %16 = arith.addf %13, %15 : vector<16x256xf32>
    %17 = vector.extract_strided_slice %16 {offsets = [0, 0], sizes = [16, 128], strides = [1, 1]} : vector<16x256xf32> to vector<16x128xf32>
    %18 = vector.extract_strided_slice %16 {offsets = [0, 128], sizes = [16, 128], strides = [1, 1]} : vector<16x256xf32> to vector<16x128xf32>
    %19 = math.exp %18 : vector<16x128xf32>
    %c0_12 = arith.constant 0 : index
    %c0_13 = arith.constant 0 : index
    %20 = vector.load %arg3[%c0_12, %c0_13] : memref<16x128xf32, #tpu.memory_space<vmem>>, vector<16x128xf32>
    %21 = arith.mulf %19, %20 : vector<16x128xf32>
    %22 = arith.addf %17, %21 : vector<16x128xf32>
    %c0_14 = arith.constant 0 : index
    %c0_15 = arith.constant 0 : index
    %23 = vector.load %arg8[%c0_14, %c0_15] : memref<16x384xf32, #tpu.memory_space<vmem>>, vector<16x128xf32>
    tpu.vector_store %arg8[%c0_14, %c0_15], %11 {strides = array<i32>} : memref<16x384xf32, #tpu.memory_space<vmem>>, vector<16x128xf32>,
    %c0_16 = arith.constant 0 : index
    %c128 = arith.constant 128 : index
    %24 = vector.load %arg8[%c0_16, %c128] : memref<16x384xf32, #tpu.memory_space<vmem>>, vector<16x128xf32>
    tpu.vector_store %arg8[%c0_16, %c128], %6 {strides = array<i32>} : memref<16x384xf32, #tpu.memory_space<vmem>>, vector<16x128xf32>,
    %c0_17 = arith.constant 0 : index
    %c256 = arith.constant 256 : index
    %25 = vector.load %arg8[%c0_17, %c256] : memref<16x384xf32, #tpu.memory_space<vmem>>, vector<16x128xf32>
    tpu.vector_store %arg8[%c0_17, %c256], %7 {strides = array<i32>} : memref<16x384xf32, #tpu.memory_space<vmem>>, vector<16x128xf32>,
    %c0_18 = arith.constant 0 : index
    %c0_19 = arith.constant 0 : index
    %26 = vector.load %arg9[%c0_18, %c0_19] : memref<16x384xf32, #tpu.memory_space<vmem>>, vector<16x128xf32>
    tpu.vector_store %arg9[%c0_18, %c0_19], %22 {strides = array<i32>} : memref<16x384xf32, #tpu.memory_space<vmem>>, vector<16x128xf32>,
    %c0_20 = arith.constant 0 : index
    %c128_21 = arith.constant 128 : index
    %27 = vector.load %arg9[%c0_20, %c128_21] : memref<16x384xf32, #tpu.memory_space<vmem>>, vector<16x128xf32>
    tpu.vector_store %arg9[%c0_20, %c128_21], %17 {strides = array<i32>} : memref<16x384xf32, #tpu.memory_space<vmem>>, vector<16x128xf32>,
    %c0_22 = arith.constant 0 : index
    %c256_23 = arith.constant 256 : index
    %28 = vector.load %arg9[%c0_22, %c256_23] : memref<16x384xf32, #tpu.memory_space<vmem>>, vector<16x128xf32>
    tpu.vector_store %arg9[%c0_22, %c256_23], %18 {strides = array<i32>} : memref<16x384xf32, #tpu.memory_space<vmem>>, vector<16x128xf32>,
    return
  }
  func.func @transform_0(%arg0: i32) -> (i32, i32) {
    %c0_i32 = arith.constant 0 : i32
    %c0_i32_0 = arith.constant 0 : i32
    return %arg0, %c0_i32 : i32, i32
  }
  func.func @transform_1(%arg0: i32) -> (i32, i32) {
    %c0_i32 = arith.constant 0 : i32
    %c0_i32_0 = arith.constant 0 : i32
    return %arg0, %c0_i32 : i32, i32
  }
  func.func @transform_2(%arg0: i32) -> (i32, i32) {
    %c0_i32 = arith.constant 0 : i32
    %c0_i32_0 = arith.constant 0 : i32
    return %arg0, %c0_i32 : i32, i32
  }
  func.func @transform_3(%arg0: i32) -> (i32, i32) {
    %c0_i32 = arith.constant 0 : i32
    %c0_i32_0 = arith.constant 0 : i32
    %c0_i32_1 = arith.constant 0 : i32
    return %c0_i32, %c0_i32_0 : i32, i32
  }
  func.func @transform_4(%arg0: i32) -> (i32, i32) {
    %c0_i32 = arith.constant 0 : i32
    %c0_i32_0 = arith.constant 0 : i32
    %c0_i32_1 = arith.constant 0 : i32
    return %c0_i32, %c0_i32_0 : i32, i32
  }
  func.func @transform_5(%arg0: i32) -> (i32, i32) {
    %c0_i32 = arith.constant 0 : i32
    %c0_i32_0 = arith.constant 0 : i32
    %c0_i32_1 = arith.constant 0 : i32
    return %c0_i32, %c0_i32_0 : i32, i32
  }
  func.func @transform_6(%arg0: i32) -> (i32, i32) {
    %c0_i32 = arith.constant 0 : i32
    %c0_i32_0 = arith.constant 0 : i32
    %c0_i32_1 = arith.constant 0 : i32
    return %c0_i32, %c0_i32_0 : i32, i32
  }
  func.func @transform_7(%arg0: i32) -> (i32, i32) {
    %c0_i32 = arith.constant 0 : i32
    %c0_i32_0 = arith.constant 0 : i32
    return %arg0, %c0_i32 : i32, i32
  }
  func.func @transform_8(%arg0: i32) -> (i32, i32) {
    %c0_i32 = arith.constant 0 : i32
    %c0_i32_0 = arith.constant 0 : i32
    return %arg0, %c0_i32 : i32, i32
  }
}

</mosaic_0001>

<bundles_post_ra>
// kernel: mim_forward.1
= control target key start
LH: loop header
LB: loop body
LE: loop exit
PB: predicated region body
PF: predicated region fallthrough
CT: control target
= control target key end

     0   :  { %v385_v3 = vmov 0.0   ;;  %s687_s3 = inlined_call_operand.vmem [shape: f32[128,256], index: 3, kind: input, shape index: {}]   ;;  %s688_s5 = inlined_call_operand.vmem [shape: f32[128,256], index: 5, kind: input, shape index: {}]   ;;  %s689_s0 = inlined_call_operand.vmem [shape: f32[16,128], index: 0, kind: input, shape index: {}]   ;;  %s690_s4 = inlined_call_operand.vmem [shape: f32[1,256], index: 4, kind: input, shape index: {}]   ;;  %s691_s7 = inlined_call_operand.vmem [shape: f32[16,384], index: 7, kind: output, shape index: {0}]   ;;  %s692_s1 = inlined_call_operand.vmem [shape: f32[16,128], index: 1, kind: input, shape index: {}]   ;;  %s693_s6 = inlined_call_operand.vmem [shape: f32[1,256], index: 6, kind: input, shape index: {}]   ;;  %s694_s8 = inlined_call_operand.vmem [shape: f32[16,384], index: 8, kind: output, shape index: {1}]   ;;  %s695_s2 = inlined_call_operand.vmem [shape: f32[16,128], index: 2, kind: input, shape index: {}]  }
   0x1   :  { %v31_v0 = vld [vmem:[%s687_s3 + $0x8] sm:$0xff]  ;;  %v33_v1 = vld [vmem:[%s687_s3 + $0x18] sm:$0xff]  ;;  %v30_v2 = vld [vmem:[%s687_s3] sm:$0xff]  ;;  %138 = vmatprep.mubr.f32.mxu0 %v385_v3  ;;  %269 = vmatprep.mubr.f32.mxu1 %v385_v3 }
   0x2   :  { %v312_v4 = vpack.c.bf16 %v33_v1, %v31_v0  ;;  %v32_v5 = vld [vmem:[%s687_s3 + $0x10] sm:$0xff]  ;;  %v35_v6 = vld [vmem:[%s687_s3 + $0x28] sm:$0xff]  ;;  %v37_v7 = vld [vmem:[%s687_s3 + $0x38] sm:$0xff] }
   0x3   :  { %v314_v8 = vpack.c.bf16 %v32_v5, %v30_v2  ;;  %v316_v9 = vpack.c.bf16 %v37_v7, %v35_v6  ;;  %v34_v10 = vld [vmem:[%s687_s3 + $0x20] sm:$0xff]  ;;  %v36_v11 = vld [vmem:[%s687_s3 + $0x30] sm:$0xff]  ;;  %v39_v12 = vld [vmem:[%s687_s3 + $0x48] sm:$0xff] }
   0x4   :  { %313 = vmatprep.subr.bf16.mxu0 %v312_v4  ;;  %v41_v13 = vld [vmem:[%s687_s3 + $0x58] sm:$0xff]  ;;  %v318_v14 = vpack.c.bf16 %v36_v11, %v34_v10  ;;  %v38_v16 = vld [vmem:[%s687_s3 + $0x40] sm:$0xff]  ;;  %v40_v17 = vld [vmem:[%s687_s3 + $0x50] sm:$0xff] }
   0x5   :  { %315 = vmatpush1.bf16.msra.mxu0 %v314_v8  ;;  %v320_v15 = vpack.c.bf16 %v41_v13, %v39_v12  ;;  %v43_v18 = vld [vmem:[%s687_s3 + $0x68] sm:$0xff]  ;;  %v45_v19 = vld [vmem:[%s687_s3 + $0x78] sm:$0xff]  ;;  %v322_v20 = vpack.c.bf16 %v40_v17, %v38_v16  ;;  %v42_v22 = vld [vmem:[%s687_s3 + $0x60] sm:$0xff] }
   0x6   :  { %317 = vmatprep.subr.bf16.mxu0 %v316_v9  ;;  %v324_v21 = vpack.c.bf16 %v45_v19, %v43_v18  ;;  %v44_v23 = vld [vmem:[%s687_s3 + $0x70] sm:$0xff]  ;;  %v47_v24 = vld [vmem:[%s687_s3 + $0x88] sm:$0xff]  ;;  %v49_v25 = vld [vmem:[%s687_s3 + $0x98] sm:$0xff] }
   0x7   :  { %v46_v26 = vld [vmem:[%s687_s3 + $0x80] sm:$0xff]  ;;  %v48_v27 = vld [vmem:[%s687_s3 + $0x90] sm:$0xff]  ;;  %v162_v28 = vld [vmem:[%s688_s5 + $0x8] sm:$0xff]  ;;  %v326_v30 = vpack.c.bf16 %v44_v23, %v42_v22  ;;  %v328_v36 = vpack.c.bf16 %v49_v25, %v47_v24 }
   0x8   :  { %v164_v29 = vld [vmem:[%s688_s5 + $0x18] sm:$0xff]  ;;  %v51_v31 = vld [vmem:[%s687_s3 + $0xa8] sm:$0xff]  ;;  %v161_v33 = vld [vmem:[%s688_s5] sm:$0xff]  ;;  %v330_v46 = vpack.c.bf16 %v48_v27, %v46_v26 }
   0x9   :  { %319 = vmatpush1.bf16.msra.mxu0 %v318_v14  ;;  %v344_v32 = vpack.c.bf16 %v164_v29, %v162_v28  ;;  %v163_v34 = vld [vmem:[%s688_s5 + $0x10] sm:$0xff]  ;;  %v166_v35 = vld [vmem:[%s688_s5 + $0x28] sm:$0xff]  ;;  %v168_v38 = vld [vmem:[%s688_s5 + $0x38] sm:$0xff] }
   0xa   :  { %321 = vmatprep.subr.bf16.mxu0 %v320_v15  ;;  %v346_v37 = vpack.c.bf16 %v163_v34, %v161_v33  ;;  %v165_v39 = vld [vmem:[%s688_s5 + $0x20] sm:$0xff]  ;;  %v167_v40 = vld [vmem:[%s688_s5 + $0x30] sm:$0xff]  ;;  %v53_v41 = vld [vmem:[%s687_s3 + $0xb8] sm:$0xff]  ;;  %v348_v42 = vpack.c.bf16 %v168_v38, %v166_v35 }
   0xb   :  { %345 = vmatprep.subr.bf16.mxu1 %v344_v32  ;;  %v170_v43 = vld [vmem:[%s688_s5 + $0x48] sm:$0xff]  ;;  %v172_v44 = vld [vmem:[%s688_s5 + $0x58] sm:$0xff]  ;;  %v350_v45 = vpack.c.bf16 %v167_v40, %v165_v39  ;;  %v169_v48 = vld [vmem:[%s688_s5 + $0x40] sm:$0xff]  ;;  %v332_v50 = vpack.c.bf16 %v53_v41, %v51_v31 }
   0xc   :  { %347 = vmatpush1.bf16.msra.mxu1 %v346_v37  ;;  %v352_v47 = vpack.c.bf16 %v172_v44, %v170_v43  ;;  %v171_v49 = vld [vmem:[%s688_s5 + $0x50] sm:$0xff]  ;;  %v50_v51 = vld [vmem:[%s687_s3 + $0xa0] sm:$0xff]  ;;  %v55_v53 = vld [vmem:[%s687_s3 + $0xc8] sm:$0xff] }
   0xd   :  { %323 = vmatpush1.bf16.msra.mxu0 %v322_v20  ;;  %349 = vmatprep.subr.bf16.mxu1 %v348_v42  ;;  %v52_v52 = vld [vmem:[%s687_s3 + $0xb0] sm:$0xff]  ;;  %v57_v54 = vld [vmem:[%s687_s3 + $0xd8] sm:$0xff]  ;;  %v354_v55 = vpack.c.bf16 %v171_v49, %v169_v48  ;;  %v54_v58 = vld [vmem:[%s687_s3 + $0xc0] sm:$0xff] }
   0xe   :  { %325 = vmatprep.subr.bf16.mxu0 %v324_v21  ;;  %v334_v56 = vpack.c.bf16 %v52_v52, %v50_v51  ;;  %v336_v57 = vpack.c.bf16 %v57_v54, %v55_v53  ;;  %v56_v59 = vld [vmem:[%s687_s3 + $0xd0] sm:$0xff]  ;;  %v59_v60 = vld [vmem:[%s687_s3 + $0xe8] sm:$0xff]  ;;  %v61_v61 = vld [vmem:[%s687_s3 + $0xf8] sm:$0xff] }
   0xf   :  { %v338_v62 = vpack.c.bf16 %v56_v59, %v54_v58  ;;  %v340_v63 = vpack.c.bf16 %v61_v61, %v59_v60  ;;  %v58_v0 = vld [vmem:[%s687_s3 + $0xe0] sm:$0xff]  ;;  %v60_v1 = vld [vmem:[%s687_s3 + $0xf0] sm:$0xff]  ;;  %v29_v5 = vld [vmem:[%s689_s0 + $0x8] sm:$0xff] }
  0x10   :  { %351 = vmatpush1.bf16.msra.mxu1 %v350_v45  ;;  %v342_v2 = vpack.c.bf16 %v60_v1, %v58_v0  ;;  %v28_v4 = vld [vmem:[%s689_s0] sm:$0xff]  ;;  %v174_v6 = vld [vmem:[%s688_s5 + $0x68] sm:$0xff]  ;;  %v176_v7 = vld [vmem:[%s688_s5 + $0x78] sm:$0xff] }
  0x11   :  { %327 = vmatpush1.bf16.msra.mxu0 %v326_v30  ;;  %353 = vmatprep.subr.bf16.mxu1 %v352_v47  ;;  %v356_v8 = vpack.c.bf16 %v176_v7, %v174_v6  ;;  %v173_v9 = vld [vmem:[%s688_s5 + $0x60] sm:$0xff]  ;;  %v175_v10 = vld [vmem:[%s688_s5 + $0x70] sm:$0xff]  ;;  %v178_v12 = vld [vmem:[%s688_s5 + $0x88] sm:$0xff] }
  0x12   :  { %329 = vmatprep.subr.bf16.mxu0 %v328_v36  ;;  %v358_v11 = vpack.c.bf16 %v175_v10, %v173_v9  ;;  %v180_v13 = vld [vmem:[%s688_s5 + $0x98] sm:$0xff]  ;;  %v177_v15 = vld [vmem:[%s688_s5 + $0x80] sm:$0xff]  ;;  %v179_v16 = vld [vmem:[%s688_s5 + $0x90] sm:$0xff]  ;;  %v64_v36 = vlaneseq }
  0x13   :  { %v360_v14 = vpack.c.bf16 %v180_v13, %v178_v12  ;;  %v362_v17 = vpack.c.bf16 %v179_v16, %v177_v15  ;;  %v182_v18 = vld [vmem:[%s688_s5 + $0xa8] sm:$0xff]  ;;  %v184_v19 = vld [vmem:[%s688_s5 + $0xb8] sm:$0xff]  ;;  %v181_v21 = vld [vmem:[%s688_s5 + $0xa0] sm:$0xff] }
  0x14   :  { %355 = vmatpush1.bf16.msra.mxu1 %v354_v55  ;;  %v364_v20 = vpack.c.bf16 %v184_v19, %v182_v18  ;;  %v183_v22 = vld [vmem:[%s688_s5 + $0xb0] sm:$0xff]  ;;  %v186_v24 = vld [vmem:[%s688_s5 + $0xc8] sm:$0xff]  ;;  %v188_v25 = vld [vmem:[%s688_s5 + $0xd8] sm:$0xff]  ;;  %v65_v37 = vshrl.u32 %v64_v36, 7 }
  0x15   :  { %331 = vmatpush1.bf16.msra.mxu0 %v330_v46  ;;  %357 = vmatprep.subr.bf16.mxu1 %v356_v8  ;;  %v366_v23 = vpack.c.bf16 %v183_v22, %v181_v21  ;;  %v185_v26 = vld [vmem:[%s688_s5 + $0xc0] sm:$0xff]  ;;  %v368_v27 = vpack.c.bf16 %v188_v25, %v186_v24  ;;  %v187_v28 = vld [vmem:[%s688_s5 + $0xd0] sm:$0xff]  ;;  %v190_v29 = vld [vmem:[%s688_s5 + $0xe8] sm:$0xff] }
  0x16   :  { %333 = vmatprep.subr.bf16.mxu0 %v332_v50  ;;  %v192_v30 = vld [vmem:[%s688_s5 + $0xf8] sm:$0xff]  ;;  %v370_v31 = vpack.c.bf16 %v187_v28, %v185_v26  ;;  %v189_v33 = vld [vmem:[%s688_s5 + $0xe0] sm:$0xff]  ;;  %v191_v34 = vld [vmem:[%s688_s5 + $0xf0] sm:$0xff]  ;;  %v66_v38 = vsub.s32 0, %v65_v37  ;;  %v70_v40 = vsub.s32 1, %v65_v37 }
  0x17   :  { %v372_v32 = vpack.c.bf16 %v192_v30, %v190_v29  ;;  %v374_v35 = vpack.c.bf16 %v191_v34, %v189_v33  ;;  %v62_v39 = vld [vmem:[%s690_s4] sm:$0x3]  ;;  %v287_v13 = vld [vmem:[%s695_s2 + $0x8] sm:$0xff] }
  0x18   :  { %359 = vmatpush1.bf16.msra.mxu1 %v358_v11  ;;  %v67_v41 = vrot.slane %v62_v39, %v66_v38  ;;  %v71_v42 = vrot.slane %v62_v39, %v70_v40  ;;  %v155_v53 = vld [vmem:[%s692_s1] sm:$0xff] }
  0x19   :  { %335 = vmatpush1.bf16.msra.mxu0 %v334_v56  ;;  %361 = vmatprep.subr.bf16.mxu1 %v360_v14  ;;  %v156_v56 = vld [vmem:[%s692_s1 + $0x8] sm:$0xff]  ;;  %v193_v61 = vld [vmem:[%s693_s6] sm:$0x3] }
  0x1a   :  { %337 = vmatprep.subr.bf16.mxu0 %v336_v57  ;;  %v286_v10 = vld [vmem:[%s695_s2] sm:$0xff] }
  0x1c   :  { %363 = vmatpush1.bf16.msra.mxu1 %v362_v17 }
  0x1d   :  { %339 = vmatpush1.bf16.msra.mxu0 %v338_v62  ;;  %365 = vmatprep.subr.bf16.mxu1 %v364_v20  ;;  %v198_v62 = vrot.slane %v193_v61, %v66_v38 }
  0x1e   :  { %341 = vmatprep.subr.bf16.mxu0 %v340_v63  ;;  %v202_v63 = vrot.slane %v193_v61, %v70_v40 }
  0x20   :  { %367 = vmatpush1.bf16.msra.mxu1 %v366_v23 }
  0x21   :  { %343 = vmatpush1.bf16.msra.mxu0 %v342_v2  ;;  %369 = vmatprep.subr.bf16.mxu1 %v368_v27 }
  0x24   :  { %139 = vmatmul.mubr.f32.vlgmr.msra.gmra.mrb[0].mxu0 %v28_v4  ;;  %371 = vmatpush1.bf16.msra.mxu1 %v370_v31 }
  0x25   :  { %144 = vmatprep.mubr.f32.mxu0 %v385_v3  ;;  %373 = vmatprep.subr.bf16.mxu1 %v372_v32 }
  0x28   :  { %145 = vmatmul.mubr.f32.gmra.mrb[2].mxu0 %v29_v5  ;;  %375 = vmatpush1.bf16.msra.mxu1 %v374_v35 }
  0xf7   :  { %v140_v43 = vpop.f32.mrb[0].mxu0 }
  0xf8   :  { %v141_v44 = vadd.f32 %v140_v43, %v67_v41  ;;  %v142_v45 = vpop.f32.mrb[1].mxu0 }
  0xf9   :  { %v143_v46 = vadd.f32 %v142_v45, %v71_v42 }
  0xfa   :  { %294 = vst [vmem:[%s691_s7 + $0x8] sm:$0xff] %v141_v44 }
  0xfb   :  { %v151_v47 = vmul.f32 1.442695, %v143_v46  ;;  %296 = vst [vmem:[%s691_s7 + $0x10] sm:$0xff] %v143_v46  ;;  %v146_v48 = vpop.f32.mrb[2].mxu0 }
  0xfc   :  { %v147_v49 = vadd.f32 %v146_v48, %v67_v41  ;;  %v148_v50 = vpop.f32.mrb[3].mxu0 }
  0xfd   :  { %377 = vpow2.f32 %v151_v47  ;;  %v149_v51 = vadd.f32 %v148_v50, %v71_v42 }
  0xfe   :  { %295 = vst [vmem:[%s691_s7 + $0x20] sm:$0xff] %v147_v49 }
  0xff   :  { %v153_v52 = vmul.f32 1.442695, %v149_v51  ;;  %297 = vst [vmem:[%s691_s7 + $0x28] sm:$0xff] %v149_v51 }
 0x101   :  { %379 = vpow2.f32 %v153_v52 }
 0x107   :  { %v378_v54 = vpop.eup %377 }
 0x108   :  { %v157_v55 = vmul.f32 %v378_v54, %v155_v53 }
 0x10a   :  { %v159_v57 = vadd.f32 %v157_v55, %v141_v44 }
 0x10b   :  { %v380_v58 = vpop.eup %379 }
 0x10c   :  { %270 = vmatmul.mubr.f32.vlgmr.msra.gmra.mrb[0].mxu1 %v159_v57  ;;  %292 = vst [vmem:[%s691_s7] sm:$0xff] %v159_v57  ;;  %v158_v59 = vmul.f32 %v380_v58, %v156_v56 }
 0x10d   :  { %275 = vmatprep.mubr.f32.mxu1 %v385_v3 }
 0x10e   :  { %v160_v60 = vadd.f32 %v158_v59, %v147_v49 }
 0x110   :  { %276 = vmatmul.mubr.f32.gmra.mrb[2].mxu1 %v160_v60  ;;  %293 = vst [vmem:[%s691_s7 + $0x18] sm:$0xff] %v160_v60 }
 0x1df   :  { %v271_v0 = vpop.f32.mrb[0].mxu1 }
 0x1e0   :  { %v272_v1 = vadd.f32 %v271_v0, %v198_v62  ;;  %v273_v2 = vpop.f32.mrb[1].mxu1 }
 0x1e1   :  { %v274_v4 = vadd.f32 %v273_v2, %v202_v63 }
 0x1e2   :  { %300 = vst [vmem:[%s694_s8 + $0x8] sm:$0xff] %v272_v1 }
 0x1e3   :  { %v282_v3 = vmul.f32 1.442695, %v274_v4  ;;  %302 = vst [vmem:[%s694_s8 + $0x10] sm:$0xff] %v274_v4  ;;  %v277_v5 = vpop.f32.mrb[2].mxu1 }
 0x1e4   :  { %v278_v6 = vadd.f32 %v277_v5, %v198_v62  ;;  %v279_v7 = vpop.f32.mrb[3].mxu1 }
 0x1e5   :  { %381 = vpow2.f32 %v282_v3  ;;  %v280_v8 = vadd.f32 %v279_v7, %v202_v63 }
 0x1e6   :  { %301 = vst [vmem:[%s694_s8 + $0x20] sm:$0xff] %v278_v6 }
 0x1e7   :  { %v284_v9 = vmul.f32 1.442695, %v280_v8  ;;  %303 = vst [vmem:[%s694_s8 + $0x28] sm:$0xff] %v280_v8 }
 0x1e9   :  { %383 = vpow2.f32 %v284_v9 }
 0x1ef   :  { %v382_v11 = vpop.eup %381 }
 0x1f0   :  { %v288_v12 = vmul.f32 %v382_v11, %v286_v10 }
 0x1f2   :  { %v290_v14 = vadd.f32 %v288_v12, %v272_v1 }
 0x1f3   :  { %v384_v15 = vpop.eup %383 }
 0x1f4   :  { %298 = vst [vmem:[%s694_s8] sm:$0xff] %v290_v14  ;;  %v289_v16 = vmul.f32 %v384_v15, %v287_v13 }
 0x1f6   :  { %v291_v17 = vadd.f32 %v289_v16, %v278_v6 }
 0x1f8   :  { %299 = vst [vmem:[%s694_s8 + $0x18] sm:$0xff] %v291_v17 }

</bundles_post_ra>
